<compile_context>
chip_gen: v5e
topology: v5e:2x2
jax: 0.10.0
libtpu: 0.0.40
codegen_flags: <defaults>
</compile_context>

<pallas_src>
import functools

import jax
import jax.numpy as jnp
from jax import lax
from jax.experimental import pallas as pl
from jax.experimental.pallas import tpu as pltpu


def _round_up(a, b):
    return (a + b - 1) // b * b


def _vmem_capacity_bytes():
    """Per-core VMEM capacity; conservative (v7x = 64 MiB) fallback if query fails."""
    try:
        cap = getattr(pltpu.get_tpu_info(), "vmem_capacity_bytes", None)
        if cap:
            return int(cap)
    except Exception:
        pass
    return 64 << 20


def _lintrans_kernel(x_ref, w_ref, b_ref, o_ref):
    # Single collapsed affine map: h = x @ W_eff + b_eff (MXU).
    h = jnp.dot(x_ref[...].astype(jnp.float32), w_ref[...],
                preferred_element_type=jnp.float32) + b_ref[...]

    # self.scale: (h - rowmin) / (rowmax - rowmin) -- no epsilon, as in PyTorch.
    zmax = jnp.max(h, axis=1, keepdims=True)
    zmin = jnp.min(h, axis=1, keepdims=True)
    # approx reciprocal (EUP) is a uniform per-row scale whose error cancels exactly
    # under the subsequent L2 normalization.
    z = (h - zmin) * pl.reciprocal(zmax - zmin, approx=True)

    # F.normalize(p=2, dim=1, eps=1e-12): z / max(||z||_2, 1e-12)
    sumsq = jnp.sum(z * z, axis=1, keepdims=True)
    inv_norm = lax.rsqrt(jnp.maximum(sumsq, 1e-24))   # == 1 / max(norm, 1e-12)
    o_ref[...] = (z * inv_norm).astype(o_ref.dtype)


def prepare_lintrans_params(params):
    """Collapse the (purely linear) nn.Linear chain into one affine map.

    params: list of (W, b) in PyTorch layout, W: (out_d, in_d), b: (out_d,)
    Returns W_eff: (d_in, d_out), b_eff: (1, d_out) such that
      x @ W_eff + b_eff == (((x @ W1.T + b1) @ W2.T + b2) ...)   (up to FP assoc.)
    Call once and reuse across forward calls.
    """
    w0, b0 = params[0]
    w_eff = jnp.asarray(w0, jnp.float32).T
    b_eff = jnp.asarray(b0, jnp.float32).reshape(1, -1)
    for w, b in params[1:]:
        wt = jnp.asarray(w, jnp.float32).T
        w_eff = w_eff @ wt
        b_eff = b_eff @ wt + jnp.asarray(b, jnp.float32).reshape(1, -1)
    return w_eff, b_eff


@functools.partial(jax.jit, static_argnames=("row_tile",))
def lintrans_forward(x, w_eff, b_eff, *, row_tile=2048):
    """LinTrans forward via one fused Pallas kernel (no padding, no extra copies).

    x: (N, d_in) float32; w_eff: (d_in, d_out); b_eff: (1, d_out)
    """
    x = jnp.asarray(x, jnp.float32)
    n, d_in = x.shape
    d_out = w_eff.shape[1]

    # ---- row tile selection -------------------------------------------------
    tm = max(8, min(_round_up(row_tile, 8), _round_up(n, 8)))
    # Keep >= 4 grid steps when possible so the "parallel" row axis can be split
    # across v7x's two TensorCores (also keeps the pipeline overlapped elsewhere).
    tm = min(tm, max(8, _round_up(pl.cdiv(n, 4), 8)))

    # Generation-aware VMEM budget; weights/bias counted once (resident, ~KiB).
    weight_bytes = (w_eff.size + b_eff.size) * 4
    cap = _vmem_capacity_bytes()
    budget = (cap * 5) // 8            # headroom for Mosaic's own scratch

    def vmem_bytes(tile):
        return 2 * tile * (d_in + d_out) * 4 + weight_bytes   # double-buffered x / out

    while tm > 8 and vmem_bytes(tm) > budget:
        tm = max(8, _round_up(tm // 2, 8))

    vmem_limit = int(min(max(vmem_bytes(tm) + (8 << 20), 16 << 20),
                         max(budget, 16 << 20)))

    grid = (pl.cdiv(n, tm),)

    return pl.pallas_call(
        _lintrans_kernel,
        out_shape=jax.ShapeDtypeStruct((n, d_out), jnp.float32),
        grid_spec=pltpu.PrefetchScalarGridSpec(
            num_scalar_prefetch=0,
            grid=grid,
            in_specs=[
                pl.BlockSpec((tm, d_in), lambda i: (i, 0)),
                # Constant block index: Pallas keeps the tiny collapsed weight and
                # bias resident across grid steps (no per-step re-DMA).
                pl.BlockSpec(w_eff.shape, lambda i: (0, 0)),
                pl.BlockSpec(b_eff.shape, lambda i: (0, 0)),
            ],
            # Last dim == full array dim (16 < 128 is legal); each (tm, d_out)
            # block is one contiguous HBM write at the true output width.
            out_specs=pl.BlockSpec((tm, d_out), lambda i: (i, 0)),
        ),
        compiler_params=pltpu.CompilerParams(
            dimension_semantics=("parallel",),   # rows independent
            vmem_limit_bytes=vmem_limit,
        ),
    )(x, w_eff, b_eff)


def lintrans_reference(x, params):
    """Plain-JAX reference mirroring the PyTorch module (layer-by-layer)."""
    h = x.astype(jnp.float32)
    for w, b in params:
        h = h @ w.T + b
    zmax = jnp.max(h, axis=1, keepdims=True)
    zmin = jnp.min(h, axis=1, keepdims=True)
    z = (h - zmin) / (zmax - zmin)
    norm = jnp.sqrt(jnp.sum(z * z, axis=1, keepdims=True))
    return z / jnp.maximum(norm, 1e-12)


def init_params(key, dims):
    """Deterministic nn.Linear-style init: U(-1/sqrt(fan_in), 1/sqrt(fan_in))."""
    params = []
    for i in range(len(dims) - 1):
        key, kw, kb = jax.random.split(key, 3)
        fan_in = dims[i]
        bound = 1.0 / jnp.sqrt(jnp.float32(fan_in))
        w = jax.random.uniform(kw, (dims[i + 1], dims[i]), jnp.float32, -bound, bound)
        b = jax.random.uniform(kb, (dims[i + 1],), jnp.float32, -bound, bound)
        params.append((w, b))
    return params


if __name__ == "__main__":
    key = jax.random.PRNGKey(0)
    key, kx = jax.random.split(key)

    # Shapes consistent with LinTrans(layers=2, dims=[32, 64, 16]);
    # 512 rows -> 4 grid steps of 128 rows (pipelining + megacore split exercised).
    n = 512
    dims = [32, 64, 16]

    x = jax.random.normal(kx, (n, dims[0]), jnp.float32)
    params = init_params(key, dims)

    # Host prep hoisted: collapse the linear chain once, reuse across calls.
    w_eff, b_eff = prepare_lintrans_params(params)

    out = lintrans_forward(x, w_eff, b_eff)
    out = jax.block_until_ready(out)

    ref = lintrans_reference(x, params)
    assert out.shape == (n, dims[-1])
    max_err = float(jnp.max(jnp.abs(out - ref)))
    assert jnp.allclose(out, ref, atol=5e-5, rtol=5e-5), f"mismatch vs reference (max abs err {max_err})"

    print("KERNEL_OK")
</pallas_src>

<mosaic_0001>
module attributes {stable_mosaic.version = 11 : i64} {
  func.func @_lintrans_kernel(%arg0: i32, %arg1: memref<128x32xf32, #tpu.memory_space<vmem>>, %arg2: memref<32x16xf32, #tpu.memory_space<vmem>>, %arg3: memref<1x16xf32, #tpu.memory_space<vmem>>, %arg4: memref<128x16xf32, #tpu.memory_space<vmem>>) attributes {dimension_semantics = [#tpu.dimension_semantics<parallel>], iteration_bounds = array<i64: 4>, scalar_prefetch = 0 : i64, scratch_operands = 0 : i64, tpu.core_type = #tpu.core_type<tc>, window_params = [{transform_indices = @transform_0, window_bounds = array<i64: 128, 32>}, {pipeline_mode = #tpu.pipeline_mode<synchronous>, transform_indices = @transform_1, window_bounds = array<i64: 32, 16>}, {pipeline_mode = #tpu.pipeline_mode<synchronous>, transform_indices = @transform_2, window_bounds = array<i64: 1, 16>}, {transform_indices = @transform_3, window_bounds = array<i64: 128, 16>}]} {
    %c0 = arith.constant 0 : index
    %c0_0 = arith.constant 0 : index
    %0 = vector.load %arg1[%c0, %c0_0] : memref<128x32xf32, #tpu.memory_space<vmem>>, vector<128x32xf32>
    %c0_1 = arith.constant 0 : index
    %c0_2 = arith.constant 0 : index
    %1 = vector.load %arg2[%c0_1, %c0_2] : memref<32x16xf32, #tpu.memory_space<vmem>>, vector<32x16xf32>
    %cst = arith.constant dense<0.000000e+00> : vector<128x16xf32>
    %2 = tpu.matmul %0, %1, %cst {dimension_numbers = #tpu.dot_dimension_numbers<[1], [0], [0], [1], [0, 0, 1, 1], [], []>} : vector<128x32xf32>, vector<32x16xf32>, vector<128x16xf32> -> vector<128x16xf32>
    %c0_3 = arith.constant 0 : index
    %c0_4 = arith.constant 0 : index
    %3 = vector.load %arg3[%c0_3, %c0_4] : memref<1x16xf32, #tpu.memory_space<vmem>>, vector<1x16xf32>
    %4 = vector.broadcast %3 : vector<1x16xf32> to vector<128x16xf32>
    %5 = arith.addf %2, %4 : vector<128x16xf32>
    %cst_5 = arith.constant dense<0xFF800000> : vector<128xf32>
    %6 = vector.multi_reduction <maximumf>, %5, %cst_5 [1] : vector<128x16xf32> to vector<128xf32>
    %7 = vector.shape_cast %6 : vector<128xf32> to vector<128x1xf32>
    %cst_6 = arith.constant dense<0x7F800000> : vector<128xf32>
    %8 = vector.multi_reduction <minimumf>, %5, %cst_6 [1] : vector<128x16xf32> to vector<128xf32>
    %9 = vector.shape_cast %8 : vector<128xf32> to vector<128x1xf32>
    %10 = vector.broadcast %9 : vector<128x1xf32> to vector<128x16xf32>
    %11 = arith.subf %5, %10 : vector<128x16xf32>
    %12 = arith.subf %7, %9 : vector<128x1xf32>
    %13 = tpu.reciprocal %12 {approx = true} : vector<128x1xf32> -> vector<128x1xf32>
    %14 = vector.broadcast %13 : vector<128x1xf32> to vector<128x16xf32>
    %15 = arith.mulf %11, %14 : vector<128x16xf32>
    %16 = arith.mulf %15, %15 : vector<128x16xf32>
    %cst_7 = arith.constant dense<0.000000e+00> : vector<128xf32>
    %17 = vector.multi_reduction <add>, %16, %cst_7 [1] : vector<128x16xf32> to vector<128xf32>
    %18 = vector.shape_cast %17 : vector<128xf32> to vector<128x1xf32>
    %cst_8 = arith.constant 1.000000e-24 : f32
    %19 = vector.broadcast %cst_8 : f32 to vector<128x1xf32>
    %20 = arith.maximumf %18, %19 : vector<128x1xf32>
    %21 = math.rsqrt %20 : vector<128x1xf32>
    %22 = vector.broadcast %21 : vector<128x1xf32> to vector<128x16xf32>
    %23 = arith.mulf %15, %22 : vector<128x16xf32>
    %c0_9 = arith.constant 0 : index
    %c0_10 = arith.constant 0 : index
    %24 = vector.load %arg4[%c0_9, %c0_10] : memref<128x16xf32, #tpu.memory_space<vmem>>, vector<128x16xf32>
    tpu.vector_store %arg4[%c0_9, %c0_10], %23 {strides = array<i32>} : memref<128x16xf32, #tpu.memory_space<vmem>>, vector<128x16xf32>,
    return
  }
  func.func @transform_0(%arg0: i32) -> (i32, i32) {
    %c0_i32 = arith.constant 0 : i32
    %c0_i32_0 = arith.constant 0 : i32
    return %arg0, %c0_i32 : i32, i32
  }
  func.func @transform_1(%arg0: i32) -> (i32, i32) {
    %c0_i32 = arith.constant 0 : i32
    %c0_i32_0 = arith.constant 0 : i32
    %c0_i32_1 = arith.constant 0 : i32
    return %c0_i32, %c0_i32_0 : i32, i32
  }
  func.func @transform_2(%arg0: i32) -> (i32, i32) {
    %c0_i32 = arith.constant 0 : i32
    %c0_i32_0 = arith.constant 0 : i32
    %c0_i32_1 = arith.constant 0 : i32
    return %c0_i32, %c0_i32_0 : i32, i32
  }
  func.func @transform_3(%arg0: i32) -> (i32, i32) {
    %c0_i32 = arith.constant 0 : i32
    %c0_i32_0 = arith.constant 0 : i32
    return %arg0, %c0_i32 : i32, i32
  }
}

</mosaic_0001>

<bundles_post_ra>
// kernel: lintrans_forward.1
= control target key start
LH: loop header
LB: loop body
LE: loop exit
PB: predicated region body
PF: predicated region fallthrough
CT: control target
= control target key end

     0   :  { %s941_s12 = smov 0   ;;  %s1280_s0 = inlined_call_operand.vmem [shape: f32[512,32], index: 0, kind: input, shape index: {}]   ;;  %s1281_s1 = inlined_call_operand.vmem [shape: f32[32,16], index: 1, kind: input, shape index: {}]   ;;  %s1282_s2 = inlined_call_operand.vmem [shape: f32[1,16], index: 2, kind: input, shape index: {}]   ;;  %s1283_s3 = inlined_call_operand.vmem [shape: f32[512,16], index: 3, kind: output, shape index: {}]  }
   0x1 LB: > { %s801_s13 = sadd.s32 4294967295, %s919_s12   ;;  %p805_p0 = scmp.ge.s32.totalorder %s919_s12, 1  ;;  %s919_s12 = sphi %s941_s12, %s13_s12  }
   0x2   : > { %p138_p1 = scmp.lt.s32.totalorder %s919_s12, 5 }
   0x4   : > { %p139_p2 = pnand %p805_p0, %p138_p1 }
   0x5   : > { %s806_s18 = sshll.u32 (!%p139_p2), %s801_s13, 4 }
   0x6   : > { %142 = sbr.rel (%p139_p2) target bundleno = 499 (0x1f3), region = 32  ;;  %p163_p3 = scmp.lt.s32.totalorder (!%p139_p2), %s806_s18, 63 }
   0xb   : > { %v193_v0 = vld [vmem:[%s1281_s1 + $0x18] sm:$0xff]  ;;  %v192_v1 = vld [vmem:[%s1281_s1 + $0x10] sm:$0xff]  ;;  %v191_v2 = vld [vmem:[%s1281_s1 + $0x8] sm:$0xff]  ;;  %s1285_s18 = smov (!%p163_p3, %s806_s18), 63  ;;  %vm198_vm0 = vcmask 261120   ;;  %vm312_vm1 = vcmask 130048  }
   0xc   : > { %259 = vmatpush.msra.mxu0 %v193_v0  ;;  %828 = vmatpush.msra.mxu1 %v193_v0  ;;  %v190_v3 = vld [vmem:[%s1281_s1] sm:$0xff]  ;;  %s807_s23 = sshll.u32 %s1285_s18, 3 }
   0xd   : > { %830 = vmatpush.msra.mxu3 %v193_v0  ;;  %829 = vmatpush.msra.mxu2 %v193_v0  ;;  %s969_s26 = scalar_lea.vmem %s1280_s0, %s807_s23  ;;  %v1006_v20 = vld [vmem:[%s1282_s2] ss:$0 sm:$0xff]  ;;  %s1227_s4 = scalar_lea.vmem %s1283_s3, %s807_s23 }
   0xe   : > { %260 = vmatpush.msra.mxu0 %v192_v1  ;;  %831 = vmatpush.msra.mxu1 %v192_v1  ;;  %v174_v4 = vld [vmem:[%s969_s26] sm:$0xff]  ;;  %v175_v8 = vld [vmem:[%s969_s26 + $0x8] sm:$0xff]  ;;  %v176_v12 = vld [vmem:[%s969_s26 + $0x10] sm:$0xff] }
   0xf   : > { %833 = vmatpush.msra.mxu3 %v192_v1  ;;  %832 = vmatpush.msra.mxu2 %v192_v1  ;;  %v178_v5 = vld [vmem:[%s969_s26 + $0x20] sm:$0xff]  ;;  %v179_v9 = vld [vmem:[%s969_s26 + $0x28] sm:$0xff]  ;;  %v180_v13 = vld [vmem:[%s969_s26 + $0x30] sm:$0xff] }
  0x10   : > { %261 = vmatpush.msra.mxu0 %v191_v2  ;;  %834 = vmatpush.msra.mxu1 %v191_v2  ;;  %v186_v6 = vld [vmem:[%s969_s26 + $0x60] sm:$0xff]  ;;  %v187_v10 = vld [vmem:[%s969_s26 + $0x68] sm:$0xff]  ;;  %v188_v14 = vld [vmem:[%s969_s26 + $0x70] sm:$0xff] }
  0x11   : > { %836 = vmatpush.msra.mxu3 %v191_v2  ;;  %835 = vmatpush.msra.mxu2 %v191_v2  ;;  %v182_v7 = vld [vmem:[%s969_s26 + $0x40] sm:$0xff]  ;;  %v183_v11 = vld [vmem:[%s969_s26 + $0x48] sm:$0xff]  ;;  %v184_v15 = vld [vmem:[%s969_s26 + $0x50] sm:$0xff] }
  0x12   : > { %262 = vmatpush.msra.mxu0 %v190_v3  ;;  %837 = vmatpush.msra.mxu1 %v190_v3  ;;  %v177_v16 = vld [vmem:[%s969_s26 + $0x18] sm:$0xff] }
  0x13   : > { %810 = vmatmul.msk.f32.vlgmr.msra.gmra.mxu0 %vm198_vm0, %v174_v4  ;;  %814 = vmatmul.msk.f32.vlgmr.msra.gmra.mxu1 %vm198_vm0, %v178_v5  ;;  %v181_v17 = vld [vmem:[%s969_s26 + $0x38] sm:$0xff] }
  0x14   : > { %839 = vmatpush.msra.mxu3 %v190_v3  ;;  %838 = vmatpush.msra.mxu2 %v190_v3  ;;  %v185_v18 = vld [vmem:[%s969_s26 + $0x58] sm:$0xff] }
  0x15   : > { %822 = vmatmul.msk.f32.vlgmr.msra.gmra.mxu3 %vm198_vm0, %v186_v6  ;;  %818 = vmatmul.msk.f32.vlgmr.msra.gmra.mxu2 %vm198_vm0, %v182_v7  ;;  %v189_v19 = vld [vmem:[%s969_s26 + $0x78] sm:$0xff] }
  0x1b   : > { %811 = vmatmul.msk.f32.gmra.mxu0 %vm198_vm0, %v175_v8  ;;  %815 = vmatmul.msk.f32.gmra.mxu1 %vm198_vm0, %v179_v9 }
  0x1d   : > { %823 = vmatmul.msk.f32.gmra.mxu3 %vm198_vm0, %v187_v10  ;;  %819 = vmatmul.msk.f32.gmra.mxu2 %vm198_vm0, %v183_v11 }
  0x23   : > { %812 = vmatmul.msk.f32.gmra.mxu0 %vm198_vm0, %v176_v12  ;;  %816 = vmatmul.msk.f32.gmra.mxu1 %vm198_vm0, %v180_v13 }
  0x25   : > { %824 = vmatmul.msk.f32.gmra.mxu3 %vm198_vm0, %v188_v14  ;;  %820 = vmatmul.msk.f32.gmra.mxu2 %vm198_vm0, %v184_v15 }
  0x2b   : > { %813 = vmatmul.msk.f32.gmra.mxu0 %vm198_vm0, %v177_v16  ;;  %817 = vmatmul.msk.f32.gmra.mxu1 %vm198_vm0, %v181_v17 }
  0x2d   : > { %821 = vmatmul.msk.f32.gmra.mxu2 %vm198_vm0, %v185_v18  ;;  %825 = vmatmul.msk.f32.gmra.mxu3 %vm198_vm0, %v189_v19 }
  0x90   : > { %v264_v21 = vpop.f32.mrf.mxu0  ;;  %v276_v22 = vpop.f32.mrf.mxu1 }
  0x91   : > { %v1009_v23 = vadd.f32 %v1006_v20, %v264_v21  ;;  %v1012_v24 = vadd.f32 %v1006_v20, %v276_v22 }
  0x93   : > { %v325_v25 = vsel %vm312_vm1, %v1012_v24, -inf  ;;  %v361_v26 = vsel %vm312_vm1, %v1009_v23, inf  ;;  %v313_v27 = vsel %vm312_vm1, %v1009_v23, -inf  ;;  %v373_v31 = vsel %vm312_vm1, %v1012_v24, inf }
  0x94   : > { %326 = vmax.xlane.f32.xlu2 %v325_v25  ;;  %362 = vmin.xlane.f32.xlu1 %v361_v26 }
  0x95   : > { %314 = vmax.xlane.f32.xlu0 %v313_v27 }
  0x98   : > { %v300_v28 = vpop.f32.mrf.mxu3  ;;  %v288_v29 = vpop.f32.mrf.mxu2 }
  0x99   : > { %v1021_v30 = vadd.f32 %v1006_v20, %v300_v28  ;;  %v1030_v34 = vadd.f32 %v1006_v20, %v288_v29  ;;  %v267_v36 = vpop.f32.mrf.mxu0  ;;  %v279_v40 = vpop.f32.mrf.mxu1 }
  0x9a   : > { %v1042_v43 = vadd.f32 %v1006_v20, %v279_v40  ;;  %v1048_v45 = vadd.f32 %v1006_v20, %v267_v36 }
  0x9b   : > { %v397_v32 = vsel %vm312_vm1, %v1021_v30, inf  ;;  %v349_v33 = vsel %vm312_vm1, %v1021_v30, -inf  ;;  %v337_v38 = vsel %vm312_vm1, %v1030_v34, -inf  ;;  %v385_v39 = vsel %vm312_vm1, %v1030_v34, inf }
  0x9c   : > { %374 = vmin.xlane.f32.xlu2 %v373_v31  ;;  %398 = vmin.xlane.f32.xlu1 %v397_v32  ;;  %v328_v46 = vsel %vm312_vm1, %v1042_v43, -inf  ;;  %v316_v48 = vsel %vm312_vm1, %v1048_v45, -inf  ;;  %v376_v52 = vsel %vm312_vm1, %v1042_v43, inf  ;;  %v364_v55 = vsel %vm312_vm1, %v1048_v45, inf }
  0x9d   : > { %350 = vmax.xlane.f32.xlu0 %v349_v33 }
  0xa0   : > { %v303_v35 = vpop.f32.mrf.mxu3  ;;  %v291_v41 = vpop.f32.mrf.mxu2 }
  0xa1   : > { %v1033_v37 = vadd.f32 %v1006_v20, %v303_v35  ;;  %v1045_v44 = vadd.f32 %v1006_v20, %v291_v41  ;;  %v270_v49 = vpop.f32.mrf.mxu0  ;;  %v282_v53 = vpop.f32.mrf.mxu1 }
  0xa2   : > { %v1057_v50 = vadd.f32 %v1006_v20, %v270_v49  ;;  %v1066_v56 = vadd.f32 %v1006_v20, %v282_v53 }
  0xa3   : > { %v352_v42 = vsel %vm312_vm1, %v1033_v37, -inf  ;;  %v388_v47 = vsel %vm312_vm1, %v1045_v44, inf  ;;  %v340_v61 = vsel %vm312_vm1, %v1045_v44, -inf  ;;  %v400_v17 = vsel %vm312_vm1, %v1033_v37, inf }
  0xa4   : > { %338 = vmax.xlane.f32.xlu2 %v337_v38  ;;  %353 = vmax.xlane.f32.xlu1 %v352_v42  ;;  %v319_v51 = vsel %vm312_vm1, %v1057_v50, -inf  ;;  %v379_v59 = vsel %vm312_vm1, %v1066_v56, inf  ;;  %v331_v3 = vsel %vm312_vm1, %v1066_v56, -inf  ;;  %v367_v10 = vsel %vm312_vm1, %v1057_v50, inf }
  0xa5   : > { %386 = vmin.xlane.f32.xlu0 %v385_v39 }
  0xa8   : > { %v306_v54 = vpop.f32.mrf.mxu3  ;;  %v294_v60 = vpop.f32.mrf.mxu2 }
  0xa9   : > { %v1069_v57 = vadd.f32 %v1006_v20, %v306_v54  ;;  %v1078_v62 = vadd.f32 %v1006_v20, %v294_v60  ;;  %v273_v1 = vpop.f32.mrf.mxu0  ;;  %v285_v2 = vpop.f32.mrf.mxu1 }
  0xaa   : > { %v1087_v4 = vadd.f32 %v1006_v20, %v273_v1  ;;  %v1090_v5 = vadd.f32 %v1006_v20, %v285_v2 }
  0xab   : > { %v355_v58 = vsel %vm312_vm1, %v1069_v57, -inf  ;;  %v391_v63 = vsel %vm312_vm1, %v1078_v62, inf  ;;  %v343_v0 = vsel %vm312_vm1, %v1078_v62, -inf }
  0xac   : > { %329 = vmax.xlane.f32.xlu2 %v328_v46  ;;  %389 = vmin.xlane.f32.xlu1 %v388_v47  ;;  %v382_v6 = vsel %vm312_vm1, %v1090_v5, inf  ;;  %v322_v7 = vsel %vm312_vm1, %v1087_v4, -inf  ;;  %v334_v14 = vsel %vm312_vm1, %v1090_v5, -inf  ;;  %v370_v18 = vsel %vm312_vm1, %v1087_v4, inf }
  0xad   : > { %317 = vmax.xlane.f32.xlu0 %v316_v48 }
  0xb0   : > { %v297_v8 = vpop.f32.mrf.mxu2  ;;  %v309_v9 = vpop.f32.mrf.mxu3 }
  0xb1   : > { %v1099_v11 = vadd.f32 %v1006_v20, %v297_v8  ;;  %v1102_v12 = vadd.f32 %v1006_v20, %v309_v9  ;;  %v403_v20 = vsel %vm312_vm1, %v1069_v57, inf }
  0xb3   : > { %v346_v13 = vsel %vm312_vm1, %v1099_v11, -inf  ;;  %v358_v15 = vsel %vm312_vm1, %v1102_v12, -inf  ;;  %v394_v16 = vsel %vm312_vm1, %v1099_v11, inf  ;;  %v406_v19 = vsel %vm312_vm1, %v1102_v12, inf }
  0xb4   : > { %365 = vmin.xlane.f32.xlu2 %v364_v55  ;;  %320 = vmax.xlane.f32.xlu1 %v319_v51 }
  0xb5   : > { %377 = vmin.xlane.f32.xlu0 %v376_v52 }
  0xbc   : > { %356 = vmax.xlane.f32.xlu2 %v355_v58  ;;  %380 = vmin.xlane.f32.xlu1 %v379_v59 }
  0xbd   : > { %341 = vmax.xlane.f32.xlu0 %v340_v61 }
  0xc4   : > { %392 = vmin.xlane.f32.xlu2 %v391_v63  ;;  %344 = vmax.xlane.f32.xlu1 %v343_v0 }
  0xc5   : > { %332 = vmax.xlane.f32.xlu0 %v331_v3 }
  0xcc   : > { %383 = vmin.xlane.f32.xlu2 %v382_v6  ;;  %323 = vmax.xlane.f32.xlu1 %v322_v7 }
  0xcd   : > { %368 = vmin.xlane.f32.xlu0 %v367_v10 }
  0xd4   : > { %347 = vmax.xlane.f32.xlu2 %v346_v13  ;;  %335 = vmax.xlane.f32.xlu1 %v334_v14 }
  0xd5   : > { %359 = vmax.xlane.f32.xlu0 %v358_v15 }
  0xdc   : > { %401 = vmin.xlane.f32.xlu2 %v400_v17  ;;  %371 = vmin.xlane.f32.xlu1 %v370_v18 }
  0xdd   : > { %395 = vmin.xlane.f32.xlu0 %v394_v16 }
  0xe4   : > { %407 = vmin.xlane.f32.xlu1 %v406_v19 }
  0xe5   : > { %404 = vmin.xlane.f32.xlu0 %v403_v20 }
 0x107   : > { %v327_v21 = vpop.xlane.xlu2 %326  ;;  %v363_v22 = vpop.xlane.xlu1 %362 }
 0x108   : > { %v315_v25 = vpop.xlane.xlu0 %314  ;;  %v409_v29 = vsub.f32 %v1009_v23, %v363_v22 }
 0x109   : > { %v425_v26 = vsub.f32 %v315_v25, %v363_v22 }
 0x10b   : > { %849 = vrcp.f32 %v425_v26 }
 0x10f   : > { %v375_v27 = vpop.xlane.xlu2 %374  ;;  %v399_v28 = vpop.xlane.xlu1 %398 }
 0x110   : > { %v429_v31 = vsub.f32 %v327_v21, %v375_v27  ;;  %v351_v32 = vpop.xlane.xlu0 %350  ;;  %v413_v40 = vsub.f32 %v1012_v24, %v375_v27  ;;  %v421_v46 = vsub.f32 %v1021_v30, %v399_v28 }
 0x111   : > { %v850_v33 = vpop.eup %849  ;;  %v437_v35 = vsub.f32 %v351_v32, %v399_v28 }
 0x112   : > { %851 = vrcp.f32 %v429_v31  ;;  %v1121_v36 = vmul.f32 %v850_v33, %v409_v29 }
 0x113   : > { %853 = vrcp.f32 %v437_v35 }
 0x114   : > { %v473_v38 = vmul.f32 %v1121_v36, %v1121_v36 }
 0x116   : > { %v489_v39 = vsel %vm312_vm1, %v473_v38, 0.0 }
 0x117   : > { %490 = vadd.xlane.f32.xlu2 %v489_v39  ;;  %v339_v41 = vpop.xlane.xlu2 %338  ;;  %v1127_v42 = vpop.xlane.xlu1 %353 }
 0x118   : > { %v852_v23 = vpop.eup %851  ;;  %v387_v47 = vpop.xlane.xlu0 %386 }
 0x119   : > { %v854_v48 = vpop.eup %853  ;;  %v1130_v49 = vmul.f32 %v852_v23, %v413_v40  ;;  %v433_v51 = vsub.f32 %v339_v41, %v387_v47  ;;  %v417_v59 = vsub.f32 %v1030_v34, %v387_v47 }
 0x11a   : > { %v1132_v52 = vmul.f32 %v854_v48, %v421_v46 }
 0x11b   : > { %855 = vrcp.f32 %v433_v51  ;;  %v477_v53 = vmul.f32 %v1130_v49, %v1130_v49 }
 0x11c   : > { %v485_v24 = vmul.f32 %v1132_v52, %v1132_v52 }
 0x11d   : > { %v501_v54 = vsel %vm312_vm1, %v477_v53, 0.0 }
 0x11e   : > { %502 = vadd.xlane.f32.xlu0 %v501_v54  ;;  %v525_v55 = vsel %vm312_vm1, %v485_v24, 0.0 }
 0x11f   : > { %526 = vadd.xlane.f32.xlu2 %v525_v55  ;;  %v330_v30 = vpop.xlane.xlu2 %329  ;;  %v390_v58 = vpop.xlane.xlu1 %389 }
 0x120   : > { %v318_v60 = vpop.xlane.xlu0 %317  ;;  %v418_v26 = vsub.f32 %v1045_v44, %v390_v58 }
 0x121   : > { %v856_v61 = vpop.eup %855 }
 0x122   : > { %v1141_v63 = vmul.f32 %v856_v61, %v417_v59 }
 0x124   : > { %v481_v0 = vmul.f32 %v1141_v63, %v1141_v63 }
 0x126   : > { %v513_v1 = vsel %vm312_vm1, %v481_v0, 0.0 }
 0x127   : > { %514 = vadd.xlane.f32.xlu1 %v513_v1  ;;  %v366_v2 = vpop.xlane.xlu2 %365  ;;  %v321_v3 = vpop.xlane.xlu1 %320 }
 0x128   : > { %v426_v6 = vsub.f32 %v318_v60, %v366_v2  ;;  %v378_v7 = vpop.xlane.xlu0 %377  ;;  %v410_v9 = vsub.f32 %v1048_v45, %v366_v2 }
 0x129   : > { %v430_v8 = vsub.f32 %v330_v30, %v378_v7  ;;  %v414_v14 = vsub.f32 %v1042_v43, %v378_v7 }
 0x12a   : > { %857 = vrcp.f32 %v426_v6 }
 0x12b   : > { %859 = vrcp.f32 %v430_v8 }
 0x12f   : > { %v1147_v34 = vpop.xlane.xlu2 %356  ;;  %v381_v10 = vpop.xlane.xlu1 %380 }
 0x130   : > { %v858_v13 = vpop.eup %857  ;;  %v342_v15 = vpop.xlane.xlu0 %341  ;;  %v415_v44 = vsub.f32 %v1066_v56, %v381_v10 }
 0x131   : > { %v860_v16 = vpop.eup %859  ;;  %v1150_v17 = vmul.f32 %v858_v13, %v410_v9  ;;  %v434_v18 = vsub.f32 %v342_v15, %v390_v58 }
 0x132   : > { %v1152_v19 = vmul.f32 %v860_v16, %v414_v14 }
 0x133   : > { %861 = vrcp.f32 %v434_v18  ;;  %v474_v20 = vmul.f32 %v1150_v17, %v1150_v17 }
 0x134   : > { %v478_v45 = vmul.f32 %v1152_v19, %v1152_v19 }
 0x135   : > { %v492_v21 = vsel %vm312_vm1, %v474_v20, 0.0 }
 0x136   : > { %493 = vadd.xlane.f32.xlu0 %v492_v21  ;;  %v504_v22 = vsel %vm312_vm1, %v478_v45, 0.0 }
 0x137   : > { %505 = vadd.xlane.f32.xlu1 %v504_v22  ;;  %v393_v43 = vpop.xlane.xlu2 %392  ;;  %v345_v25 = vpop.xlane.xlu1 %344 }
 0x138   : > { %v435_v27 = vsub.f32 %v345_v25, %v393_v43  ;;  %v333_v28 = vpop.xlane.xlu0 %332  ;;  %v419_v38 = vsub.f32 %v1078_v62, %v393_v43 }
 0x139   : > { %v862_v29 = vpop.eup %861  ;;  %v431_v31 = vsub.f32 %v333_v28, %v381_v10 }
 0x13a   : > { %863 = vrcp.f32 %v435_v27  ;;  %v1161_v32 = vmul.f32 %v862_v29, %v418_v26 }
 0x13b   : > { %865 = vrcp.f32 %v431_v31 }
 0x13c   : > { %v482_v33 = vmul.f32 %v1161_v32, %v1161_v32 }
 0x13e   : > { %v516_v35 = vsel %vm312_vm1, %v482_v33, 0.0 }
 0x13f   : > { %517 = vadd.xlane.f32.xlu2 %v516_v35  ;;  %v384_v39 = vpop.xlane.xlu2 %383  ;;  %v324_v40 = vpop.xlane.xlu1 %323 }
 0x140   : > { %v864_v41 = vpop.eup %863  ;;  %v369_v23 = vpop.xlane.xlu0 %368  ;;  %v416_v2 = vsub.f32 %v1090_v5, %v384_v39 }
 0x141   : > { %v866_v46 = vpop.eup %865  ;;  %v427_v47 = vsub.f32 %v321_v3, %v369_v23  ;;  %v1168_v48 = vmul.f32 %v864_v41, %v419_v38  ;;  %v411_v30 = vsub.f32 %v1057_v50, %v369_v23 }
 0x142   : > { %v1170_v51 = vmul.f32 %v866_v46, %v415_v44 }
 0x143   : > { %867 = vrcp.f32 %v427_v47  ;;  %v483_v53 = vmul.f32 %v1168_v48, %v1168_v48 }
 0x144   : > { %v479_v62 = vmul.f32 %v1170_v51, %v1170_v51 }
 0x145   : > { %v519_v24 = vsel %vm312_vm1, %v483_v53, 0.0 }
 0x146   : > { %520 = vadd.xlane.f32.xlu0 %v519_v24  ;;  %v507_v54 = vsel %vm312_vm1, %v479_v62, 0.0 }
 0x147   : > { %508 = vadd.xlane.f32.xlu2 %v507_v54  ;;  %v348_v56 = vpop.xlane.xlu2 %347  ;;  %v336_v55 = vpop.xlane.xlu1 %335 }
 0x148   : > { %v432_v58 = vsub.f32 %v336_v55, %v384_v39  ;;  %v360_v59 = vpop.xlane.xlu0 %359 }
 0x149   : > { %v868_v60 = vpop.eup %867 }
 0x14a   : > { %v1179_v61 = vmul.f32 %v868_v60, %v411_v30  ;;  %869 = vrcp.f32 %v432_v58 }
 0x14c   : > { %v475_v0 = vmul.f32 %v1179_v61, %v1179_v61 }
 0x14e   : > { %v495_v1 = vsel %vm312_vm1, %v475_v0, 0.0 }
 0x14f   : > { %496 = vadd.xlane.f32.xlu1 %v495_v1  ;;  %v402_v3 = vpop.xlane.xlu2 %401  ;;  %v372_v6 = vpop.xlane.xlu1 %371 }
 0x150   : > { %v870_v7 = vpop.eup %869  ;;  %v438_v8 = vsub.f32 %v1127_v42, %v402_v3  ;;  %v428_v50 = vsub.f32 %v324_v40, %v372_v6  ;;  %v396_v9 = vpop.xlane.xlu0 %395  ;;  %v422_v5 = vsub.f32 %v1033_v37, %v402_v3  ;;  %v412_v42 = vsub.f32 %v1087_v4, %v372_v6 }
 0x151   : > { %v436_v10 = vsub.f32 %v348_v56, %v396_v9  ;;  %v1186_v13 = vmul.f32 %v870_v7, %v416_v2  ;;  %v420_v43 = vsub.f32 %v1099_v11, %v396_v9 }
 0x152   : > { %871 = vrcp.f32 %v438_v8 }
 0x153   : > { %873 = vrcp.f32 %v428_v50  ;;  %v480_v14 = vmul.f32 %v1186_v13, %v1186_v13 }
 0x154   : > { %875 = vrcp.f32 %v436_v10 }
 0x155   : > { %v510_v15 = vsel %vm312_vm1, %v480_v14, 0.0 }
 0x156   : > { %511 = vadd.xlane.f32.xlu0 %v510_v15 }
 0x157   : > { %v408_v16 = vpop.xlane.xlu1 %407 }
 0x158   : > { %v872_v18 = vpop.eup %871  ;;  %v440_v20 = vsub.f32 %v360_v59, %v408_v16  ;;  %v405_v45 = vpop.xlane.xlu0 %404  ;;  %v424_v31 = vsub.f32 %v1102_v12, %v408_v16 }
 0x159   : > { %v874_v21 = vpop.eup %873  ;;  %v1193_v22 = vmul.f32 %v872_v18, %v422_v5  ;;  %v439_v25 = vsub.f32 %v1147_v34, %v405_v45  ;;  %v423_v38 = vsub.f32 %v1069_v57, %v405_v45 }
 0x15a   : > { %v876_v26 = vpop.eup %875  ;;  %v1197_v27 = vmul.f32 %v874_v21, %v412_v42  ;;  %877 = vrcp.f32 %v440_v20 }
 0x15b   : > { %v1199_v28 = vmul.f32 %v876_v26, %v420_v43  ;;  %879 = vrcp.f32 %v439_v25  ;;  %v486_v37 = vmul.f32 %v1193_v22, %v1193_v22 }
 0x15c   : > { %v476_v4 = vmul.f32 %v1197_v27, %v1197_v27 }
 0x15d   : > { %v528_v29 = vsel %vm312_vm1, %v486_v37, 0.0  ;;  %v484_v11 = vmul.f32 %v1199_v28, %v1199_v28 }
 0x15e   : > { %529 = vadd.xlane.f32.xlu0 %v528_v29  ;;  %v498_v34 = vsel %vm312_vm1, %v476_v4, 0.0 }
 0x15f   : > { %499 = vadd.xlane.f32.xlu2 %v498_v34  ;;  %v522_v33 = vsel %vm312_vm1, %v484_v11, 0.0 }
 0x160   : > { %v878_v35 = vpop.eup %877  ;;  %523 = vadd.xlane.f32.xlu1 %v522_v33 }
 0x161   : > { %v880_v39 = vpop.eup %879  ;;  %v1212_v40 = vmul.f32 %v878_v35, %v424_v31 }
 0x162   : > { %v1214_v41 = vmul.f32 %v880_v39, %v423_v38 }
 0x163   : > { %v488_v44 = vmul.f32 %v1212_v40, %v1212_v40 }
 0x164   : > { %v487_v23 = vmul.f32 %v1214_v41, %v1214_v41 }
 0x165   : > { %v534_v12 = vsel %vm312_vm1, %v488_v44, 0.0 }
 0x166   : > { %v531_v46 = vsel %vm312_vm1, %v487_v23, 0.0 }
 0x167   : > { %535 = vadd.xlane.f32.xlu2 %v534_v12 }
 0x168   : > { %532 = vadd.xlane.f32.xlu1 %v531_v46 }
 0x18a   : > { %v491_v47 = vpop.xlane.xlu2 %490 }
 0x18b   : > { %v537_v57 = vmax.f32 %v491_v47, 1e-24 }
 0x18d   : > { %881 = vrsqrt.f32 %v537_v57  ;;  %vm559_vm3 = vweird.f32 %v537_v57 }
 0x191   : > { %v503_v53 = vpop.xlane.xlu0 %502 }
 0x192   : > { %v527_v62 = vpop.xlane.xlu2 %526  ;;  %v541_v24 = vmax.f32 %v503_v53, 1e-24 }
 0x193   : > { %v882_v54 = vpop.eup %881  ;;  %v549_v56 = vmax.f32 %v527_v62, 1e-24 }
 0x194   : > { %v554_v55 = vmul.f32 %v882_v54, %v537_v57  ;;  %883 = vrsqrt.f32 %v541_v24  ;;  %vm560_vm2 = vweird.f32 %v882_v54  ;;  %vm599_vm7 = vweird.f32 %v541_v24 }
 0x195   : > { %885 = vrsqrt.f32 %v549_v56  ;;  %vm561_vm4 = vmor %vm559_vm3, %vm560_vm2  ;;  %vm679_vm8 = vweird.f32 %v549_v56 }
 0x196   : > { %v555_v30 = vmul.f32 %v882_v54, %v554_v55 }
 0x198   : > { %v556_v58 = vmul.f32 0.5, %v555_v30 }
 0x19a   : > { %v884_v59 = vpop.eup %883  ;;  %v557_v60 = vsub.f32 1.5, %v556_v58  ;;  %v515_v0 = vpop.xlane.xlu1 %514 }
 0x19b   : > { %v886_v1 = vpop.eup %885  ;;  %v594_v2 = vmul.f32 %v884_v59, %v541_v24  ;;  %v545_v3 = vmax.f32 %v515_v0, 1e-24  ;;  %vm600_vm5 = vweird.f32 %v884_v59 }
 0x19c   : > { %v558_v6 = vmul.f32 %v882_v54, %v557_v60  ;;  %v674_v7 = vmul.f32 %v886_v1, %v549_v56  ;;  %vm680_vm6 = vweird.f32 %v886_v1  ;;  %vm601_vm9 = vmor %vm599_vm7, %vm600_vm5 }
 0x19d   : > { %v595_v8 = vmul.f32 %v884_v59, %v594_v2  ;;  %887 = vrsqrt.f32 %v545_v3  ;;  %vm681_vm10 = vmor %vm679_vm8, %vm680_vm6  ;;  %vm639_vm12 = vweird.f32 %v545_v3 }
 0x19e   : > { %v562_v50 = vsel %vm561_vm4, %v882_v54, %v558_v6  ;;  %v675_v9 = vmul.f32 %v886_v1, %v674_v7 }
 0x19f   : > { %v713_v10 = vmul.f32 %v562_v50, %v1121_v36  ;;  %v596_v14 = vmul.f32 0.5, %v595_v8 }
 0x1a0   : > { %v676_v15 = vmul.f32 0.5, %v675_v9 }
 0x1a1   : > { %729 = vst.msk [vmem:[%s1227_s4] sm:$0xff] %vm312_vm1, %v713_v10  ;;  %v597_v5 = vsub.f32 1.5, %v596_v14 }
 0x1a2   : > { %v677_v16 = vsub.f32 1.5, %v676_v15 }
 0x1a3   : > { %v888_v18 = vpop.eup %887  ;;  %v598_v42 = vmul.f32 %v884_v59, %v597_v5 }
 0x1a4   : > { %v678_v20 = vmul.f32 %v886_v1, %v677_v16  ;;  %v634_v45 = vmul.f32 %v888_v18, %v545_v3  ;;  %vm640_vm11 = vweird.f32 %v888_v18 }
 0x1a5   : > { %v602_v21 = vsel %vm601_vm9, %v884_v59, %v598_v42  ;;  %vm641_vm13 = vmor %vm639_vm12, %vm640_vm11 }
 0x1a6   : > { %v682_v36 = vsel %vm681_vm10, %v886_v1, %v678_v20  ;;  %v717_v43 = vmul.f32 %v602_v21, %v1130_v49  ;;  %v635_v25 = vmul.f32 %v888_v18, %v634_v45 }
 0x1a7   : > { %v725_v26 = vmul.f32 %v682_v36, %v1132_v52 }
 0x1a8   : > { %733 = vst.msk [vmem:[%s1227_s4 + $0x20] sm:$0xff] %vm312_vm1, %v717_v43  ;;  %v636_v37 = vmul.f32 0.5, %v635_v25 }
 0x1a9   : > { %741 = vst.msk [vmem:[%s1227_s4 + $0x60] sm:$0xff] %vm312_vm1, %v725_v26  ;;  %v494_v4 = vpop.xlane.xlu0 %493 }
 0x1aa   : > { %v637_v29 = vsub.f32 1.5, %v636_v37  ;;  %v506_v11 = vpop.xlane.xlu1 %505  ;;  %v538_v34 = vmax.f32 %v494_v4, 1e-24 }
 0x1ab   : > { %v542_v31 = vmax.f32 %v506_v11, 1e-24 }
 0x1ac   : > { %v638_v33 = vmul.f32 %v888_v18, %v637_v29  ;;  %889 = vrsqrt.f32 %v538_v34  ;;  %vm569_vm0 = vweird.f32 %v538_v34 }
 0x1ad   : > { %891 = vrsqrt.f32 %v542_v31  ;;  %vm609_vm2 = vweird.f32 %v542_v31 }
 0x1ae   : > { %v642_v49 = vsel %vm641_vm13, %v888_v18, %v638_v33 }
 0x1af   : > { %v721_v52 = vmul.f32 %v642_v49, %v1141_v63 }
 0x1b1   : > { %737 = vst.msk [vmem:[%s1227_s4 + $0x40] sm:$0xff] %vm312_vm1, %v721_v52 }
 0x1b2   : > { %v890_v35 = vpop.eup %889  ;;  %v518_v38 = vpop.xlane.xlu2 %517 }
 0x1b3   : > { %v892_v39 = vpop.eup %891  ;;  %v564_v44 = vmul.f32 %v890_v35, %v538_v34  ;;  %v546_v23 = vmax.f32 %v518_v38, 1e-24  ;;  %vm570_vm14 = vweird.f32 %v890_v35 }
 0x1b4   : > { %v604_v12 = vmul.f32 %v892_v39, %v542_v31  ;;  %vm610_vm15 = vweird.f32 %v892_v39  ;;  %vm571_vm3 = vmor %vm569_vm0, %vm570_vm14 }
 0x1b5   : > { %v565_v46 = vmul.f32 %v890_v35, %v564_v44  ;;  %893 = vrsqrt.f32 %v546_v23  ;;  %vm611_vm4 = vmor %vm609_vm2, %vm610_vm15  ;;  %vm649_vm6 = vweird.f32 %v546_v23 }
 0x1b6   : > { %v605_v47 = vmul.f32 %v892_v39, %v604_v12 }
 0x1b7   : > { %v566_v57 = vmul.f32 0.5, %v565_v46 }
 0x1b8   : > { %v606_v53 = vmul.f32 0.5, %v605_v47 }
 0x1b9   : > { %v567_v62 = vsub.f32 1.5, %v566_v57  ;;  %v521_v24 = vpop.xlane.xlu0 %520 }
 0x1ba   : > { %v607_v54 = vsub.f32 1.5, %v606_v53  ;;  %v509_v56 = vpop.xlane.xlu2 %508  ;;  %v547_v63 = vmax.f32 %v521_v24, 1e-24 }
 0x1bb   : > { %v894_v55 = vpop.eup %893  ;;  %v568_v30 = vmul.f32 %v890_v35, %v567_v62  ;;  %v543_v58 = vmax.f32 %v509_v56, 1e-24 }
 0x1bc   : > { %v608_v59 = vmul.f32 %v892_v39, %v607_v54  ;;  %v644_v60 = vmul.f32 %v894_v55, %v546_v23  ;;  %895 = vrsqrt.f32 %v547_v63  ;;  %vm650_vm5 = vweird.f32 %v894_v55 }
 0x1bd   : > { %v572_v0 = vsel %vm571_vm3, %v890_v35, %v568_v30  ;;  %897 = vrsqrt.f32 %v543_v58  ;;  %vm651_vm7 = vmor %vm649_vm6, %vm650_vm5  ;;  %vm659_vm10 = vweird.f32 %v547_v63  ;;  %vm619_vm11 = vweird.f32 %v543_v58 }
 0x1be   : > { %v612_v1 = vsel %vm611_vm4, %v892_v39, %v608_v59  ;;  %v714_v2 = vmul.f32 %v572_v0, %v1150_v17  ;;  %v645_v3 = vmul.f32 %v894_v55, %v644_v60 }
 0x1bf   : > { %v718_v6 = vmul.f32 %v612_v1, %v1152_v19 }
 0x1c0   : > { %730 = vst.msk [vmem:[%s1227_s4 + $0x8] sm:$0xff] %vm312_vm1, %v714_v2  ;;  %v646_v7 = vmul.f32 0.5, %v645_v3 }
 0x1c1   : > { %734 = vst.msk [vmem:[%s1227_s4 + $0x28] sm:$0xff] %vm312_vm1, %v718_v6 }
 0x1c2   : > { %v896_v8 = vpop.eup %895  ;;  %v647_v50 = vsub.f32 1.5, %v646_v7  ;;  %v497_v9 = vpop.xlane.xlu1 %496 }
 0x1c3   : > { %v898_v10 = vpop.eup %897  ;;  %v654_v14 = vmul.f32 %v896_v8, %v547_v63  ;;  %v539_v15 = vmax.f32 %v497_v9, 1e-24  ;;  %vm660_vm8 = vweird.f32 %v896_v8 }
 0x1c4   : > { %v648_v5 = vmul.f32 %v894_v55, %v647_v50  ;;  %v614_v16 = vmul.f32 %v898_v10, %v543_v58  ;;  %vm620_vm9 = vweird.f32 %v898_v10  ;;  %vm661_vm12 = vmor %vm659_vm10, %vm660_vm8 }
 0x1c5   : > { %v655_v17 = vmul.f32 %v896_v8, %v654_v14  ;;  %899 = vrsqrt.f32 %v539_v15  ;;  %vm621_vm13 = vmor %vm619_vm11, %vm620_vm9  ;;  %vm579_vm15 = vweird.f32 %v539_v15 }
 0x1c6   : > { %v652_v19 = vsel %vm651_vm7, %v894_v55, %v648_v5  ;;  %v615_v18 = vmul.f32 %v898_v10, %v614_v16 }
 0x1c7   : > { %v722_v42 = vmul.f32 %v652_v19, %v1161_v32  ;;  %v656_v20 = vmul.f32 0.5, %v655_v17 }
 0x1c8   : > { %v616_v45 = vmul.f32 0.5, %v615_v18 }
 0x1c9   : > { %738 = vst.msk [vmem:[%s1227_s4 + $0x48] sm:$0xff] %vm312_vm1, %v722_v42  ;;  %v657_v21 = vsub.f32 1.5, %v656_v20  ;;  %v512_v36 = vpop.xlane.xlu0 %511 }
 0x1ca   : > { %v617_v43 = vsub.f32 1.5, %v616_v45  ;;  %v544_v25 = vmax.f32 %v512_v36, 1e-24 }
 0x1cb   : > { %v900_v26 = vpop.eup %899  ;;  %v658_v37 = vmul.f32 %v896_v8, %v657_v21 }
 0x1cc   : > { %v618_v4 = vmul.f32 %v898_v10, %v617_v43  ;;  %v574_v29 = vmul.f32 %v900_v26, %v539_v15  ;;  %901 = vrsqrt.f32 %v544_v25  ;;  %vm580_vm14 = vweird.f32 %v900_v26 }
 0x1cd   : > { %v662_v32 = vsel %vm661_vm12, %v896_v8, %v658_v37  ;;  %vm581_vm0 = vmor %vm579_vm15, %vm580_vm14  ;;  %vm629_vm3 = vweird.f32 %v544_v25 }
 0x1ce   : > { %v622_v11 = vsel %vm621_vm13, %v898_v10, %v618_v4  ;;  %v723_v34 = vmul.f32 %v662_v32, %v1168_v48  ;;  %v575_v31 = vmul.f32 %v900_v26, %v574_v29 }
 0x1cf   : > { %v719_v33 = vmul.f32 %v622_v11, %v1170_v51 }
 0x1d0   : > { %739 = vst.msk [vmem:[%s1227_s4 + $0x50] sm:$0xff] %vm312_vm1, %v723_v34  ;;  %v576_v49 = vmul.f32 0.5, %v575_v31 }
 0x1d1   : > { %735 = vst.msk [vmem:[%s1227_s4 + $0x30] sm:$0xff] %vm312_vm1, %v719_v33  ;;  %v530_v52 = vpop.xlane.xlu0 %529 }
 0x1d2   : > { %v902_v35 = vpop.eup %901  ;;  %v577_v38 = vsub.f32 1.5, %v576_v49  ;;  %v500_v39 = vpop.xlane.xlu2 %499  ;;  %v550_v44 = vmax.f32 %v530_v52, 1e-24 }
 0x1d3   : > { %v624_v23 = vmul.f32 %v902_v35, %v544_v25  ;;  %v540_v12 = vmax.f32 %v500_v39, 1e-24  ;;  %v524_v46 = vpop.xlane.xlu1 %523  ;;  %vm630_vm2 = vweird.f32 %v902_v35 }
 0x1d4   : > { %v578_v47 = vmul.f32 %v900_v26, %v577_v38  ;;  %v548_v48 = vmax.f32 %v524_v46, 1e-24  ;;  %903 = vrsqrt.f32 %v550_v44  ;;  %vm631_vm4 = vmor %vm629_vm3, %vm630_vm2  ;;  %vm689_vm8 = vweird.f32 %v550_v44 }
 0x1d5   : > { %v625_v51 = vmul.f32 %v902_v35, %v624_v23  ;;  %905 = vrsqrt.f32 %v540_v12  ;;  %vm589_vm9 = vweird.f32 %v540_v12 }
 0x1d6   : > { %v582_v57 = vsel %vm581_vm0, %v900_v26, %v578_v47  ;;  %907 = vrsqrt.f32 %v548_v48  ;;  %vm669_vm12 = vweird.f32 %v548_v48 }
 0x1d7   : > { %v715_v53 = vmul.f32 %v582_v57, %v1179_v61  ;;  %v626_v62 = vmul.f32 0.5, %v625_v51 }
 0x1d9   : > { %731 = vst.msk [vmem:[%s1227_s4 + $0x10] sm:$0xff] %vm312_vm1, %v715_v53  ;;  %v627_v24 = vsub.f32 1.5, %v626_v62 }
 0x1da   : > { %v904_v54 = vpop.eup %903  ;;  %v536_v56 = vpop.xlane.xlu2 %535 }
 0x1db   : > { %v906_v63 = vpop.eup %905  ;;  %v628_v55 = vmul.f32 %v902_v35, %v627_v24  ;;  %v684_v30 = vmul.f32 %v904_v54, %v550_v44  ;;  %v552_v58 = vmax.f32 %v536_v56, 1e-24  ;;  %v533_v59 = vpop.xlane.xlu1 %532  ;;  %vm690_vm5 = vweird.f32 %v904_v54 }
 0x1dc   : > { %v908_v60 = vpop.eup %907  ;;  %v584_v0 = vmul.f32 %v906_v63, %v540_v12  ;;  %v551_v1 = vmax.f32 %v533_v59, 1e-24  ;;  %vm590_vm6 = vweird.f32 %v906_v63  ;;  %vm691_vm10 = vmor %vm689_vm8, %vm690_vm5 }
 0x1dd   : > { %v632_v2 = vsel %vm631_vm4, %v902_v35, %v628_v55  ;;  %v664_v61 = vmul.f32 %v908_v60, %v548_v48  ;;  %v685_v3 = vmul.f32 %v904_v54, %v684_v30  ;;  %909 = vrsqrt.f32 %v552_v58  ;;  %vm591_vm11 = vmor %vm589_vm9, %vm590_vm6 }
 0x1de   : > { %v720_v6 = vmul.f32 %v632_v2, %v1186_v13  ;;  %v585_v7 = vmul.f32 %v906_v63, %v584_v0  ;;  %911 = vrsqrt.f32 %v551_v1  ;;  %vm670_vm7 = vweird.f32 %v908_v60 }
 0x1df   : > { %v665_v8 = vmul.f32 %v908_v60, %v664_v61  ;;  %v686_v50 = vmul.f32 0.5, %v685_v3  ;;  %vm671_vm13 = vmor %vm669_vm12, %vm670_vm7  ;;  %vm709_vm0 = vweird.f32 %v552_v58  ;;  %vm699_vm3 = vweird.f32 %v551_v1 }
 0x1e0   : > { %736 = vst.msk [vmem:[%s1227_s4 + $0x38] sm:$0xff] %vm312_vm1, %v720_v6  ;;  %v586_v9 = vmul.f32 0.5, %v585_v7 }
 0x1e1   : > { %v666_v10 = vmul.f32 0.5, %v665_v8  ;;  %v687_v14 = vsub.f32 1.5, %v686_v50 }
 0x1e2   : > { %v587_v15 = vsub.f32 1.5, %v586_v9 }
 0x1e3   : > { %v667_v5 = vsub.f32 1.5, %v666_v10  ;;  %v688_v16 = vmul.f32 %v904_v54, %v687_v14  ;;  %v910_v17 = vpop.eup %909 }
 0x1e4   : > { %v588_v19 = vmul.f32 %v906_v63, %v587_v15  ;;  %v912_v13 = vpop.eup %911  ;;  %v704_v20 = vmul.f32 %v910_v17, %v552_v58  ;;  %vm710_vm14 = vweird.f32 %v910_v17 }
 0x1e5   : > { %v668_v18 = vmul.f32 %v908_v60, %v667_v5  ;;  %v692_v42 = vsel %vm691_vm10, %v904_v54, %v688_v16  ;;  %v694_v36 = vmul.f32 %v912_v13, %v551_v1  ;;  %vm700_vm15 = vweird.f32 %v912_v13  ;;  %vm711_vm2 = vmor %vm709_vm0, %vm710_vm14 }
 0x1e6   : > { %v592_v45 = vsel %vm591_vm11, %v906_v63, %v588_v19  ;;  %v726_v21 = vmul.f32 %v692_v42, %v1193_v22  ;;  %v705_v26 = vmul.f32 %v910_v17, %v704_v20  ;;  %vm701_vm4 = vmor %vm699_vm3, %vm700_vm15 }
 0x1e7   : > { %v716_v43 = vmul.f32 %v592_v45, %v1197_v27  ;;  %v672_v25 = vsel %vm671_vm13, %v908_v60, %v668_v18  ;;  %v695_v4 = vmul.f32 %v912_v13, %v694_v36 }
 0x1e8   : > { %v724_v37 = vmul.f32 %v672_v25, %v1199_v28  ;;  %742 = vst.msk [vmem:[%s1227_s4 + $0x68] sm:$0xff] %vm312_vm1, %v726_v21  ;;  %v706_v29 = vmul.f32 0.5, %v705_v26 }
 0x1e9   : > { %732 = vst.msk [vmem:[%s1227_s4 + $0x18] sm:$0xff] %vm312_vm1, %v716_v43  ;;  %v696_v32 = vmul.f32 0.5, %v695_v4 }
 0x1ea   : > { %740 = vst.msk [vmem:[%s1227_s4 + $0x58] sm:$0xff] %vm312_vm1, %v724_v37  ;;  %v707_v11 = vsub.f32 1.5, %v706_v29 }
 0x1eb   : > { %v697_v22 = vsub.f32 1.5, %v696_v32 }
 0x1ec   : > { %v708_v27 = vmul.f32 %v910_v17, %v707_v11 }
 0x1ed   : > { %v698_v34 = vmul.f32 %v912_v13, %v697_v22 }
 0x1ee   : > { %v712_v28 = vsel %vm711_vm2, %v910_v17, %v708_v27 }
 0x1ef   : > { %v728_v31 = vmul.f32 %v712_v28, %v1212_v40  ;;  %v702_v33 = vsel %vm701_vm4, %v912_v13, %v698_v34 }
 0x1f0   : > { %v727_v49 = vmul.f32 %v702_v33, %v1214_v41 }
 0x1f1   : > { %744 = vst.msk [vmem:[%s1227_s4 + $0x78] sm:$0xff] %vm312_vm1, %v728_v31 }
 0x1f2   : > { %743 = vst.msk [vmem:[%s1227_s4 + $0x70] sm:$0xff] %vm312_vm1, %v727_v49 }
 0x1f3 PF: > { %s13_s12 = sadd.s32 1, %s919_s12  }
 0x1f4   : > { %p10_p4 = scmp.ge.s32.totalorder %s13_s12, 6  }
 0x1f6   :  { %12 = sbr.rel (!%p10_p4) target bundleno = 1 (0x1), region = 62 }

</bundles_post_ra>
